<compile_context>
chip_gen: v7x
topology: tpu7x:2x2x1
jax: 0.10.0
libtpu: 0.0.40
codegen_flags: <defaults>
</compile_context>

<pallas_src>
import functools
import math

import jax
import jax.numpy as jnp
from jax.experimental import pallas as pl
from jax.experimental.pallas import tpu as pltpu


_VMEM_BUDGET = 40 * 1024 * 1024   # tile-planning budget (fits v7x's 64 MiB physical VMEM)
_VMEM_LIMIT = 48 * 1024 * 1024    # scoped-VMEM limit handed to Mosaic (> v5e's 16 MiB default)


def _round_up(x, m):
    return ((x + m - 1) // m) * m


def _cdiv(a, b):
    return (a + b - 1) // b


# ------------------------------------------------------------------ stage 1 --
def _support_kernel(x_ref, w_ref, o_ref):
    # x_ref: (TR, F_in) native dtype   w_ref: (F_in, F_out)   o_ref: (TR, F_out) bf16
    o_ref[...] = jnp.dot(
        x_ref[...].astype(jnp.bfloat16),
        w_ref[...].astype(jnp.bfloat16),
        preferred_element_type=jnp.float32,
    ).astype(o_ref.dtype)


# --------------------------------------------------- stage 2 (full-N stripe) --
def _agg_full_kernel(*refs, has_bias):
    # adj_ref: (TM, N) native dtype    sup_ref: (N, F_out) bf16 (resident per batch)
    # o_ref:   (TM, F_out) f32
    if has_bias:
        adj_ref, sup_ref, bias_ref, o_ref = refs
    else:
        adj_ref, sup_ref, o_ref = refs

    out = jnp.dot(
        adj_ref[...].astype(jnp.bfloat16),
        sup_ref[...],
        preferred_element_type=jnp.float32,
    )
    if has_bias:
        out = out + bias_ref[...]          # (1, F_out) broadcast, f32
    o_ref[...] = out


# --------------------------------------------- stage 2 (k-tiled large-N path) --
def _agg_ktiled_kernel(*refs, has_bias, tk, n_cols, mask_cols):
    # adj_ref: (TM, TK) native dtype   sup_ref: (TK, F_out) bf16 (zero-padded rows)
    # o_ref:   (TM, F_out) f32 -- resident across the k axis, accumulate in place.
    if has_bias:
        adj_ref, sup_ref, bias_ref, o_ref = refs
    else:
        adj_ref, sup_ref, o_ref = refs

    k = pl.program_id(2)

    @pl.when(k == 0)
    def _init():
        o_ref[...] = jnp.zeros_like(o_ref)

    adj = adj_ref[...]
    if mask_cols:
        # Ragged last k tile: adj columns >= N hold garbage (no wrapper padding),
        # zero them so they contribute exactly 0 (support rows there are real zeros).
        col = jax.lax.broadcasted_iota(jnp.int32, adj.shape, 1) + k * tk
        adj = jnp.where(col < n_cols, adj, jnp.zeros_like(adj))

    o_ref[...] += jnp.dot(
        adj.astype(jnp.bfloat16),
        sup_ref[...],
        preferred_element_type=jnp.float32,
    )

    if has_bias:
        @pl.when(k == pl.num_programs(2) - 1)
        def _bias():
            o_ref[...] += bias_ref[...]


# --------------------------------------------------------------- tile picking --
def _full_path_bytes(tm, n, f_out):
    adj = 2 * tm * n * 4        # adj stripe, f32, double-buffered
    sup = 2 * n * f_out * 2     # support slab, bf16, double-buffered
    out = 2 * tm * f_out * 4    # output block, f32, double-buffered
    return adj + sup + out + (1 << 20)   # + slack for bias / internal scratch


def _pick_tm_full(b, n, f_out, budget):
    cap = _round_up(min(n, 512), 8)
    cands = sorted({c for c in (512, 256, 128, 64, 32, 16, 8, cap) if c <= cap},
                   reverse=True)
    fitting = [t for t in cands if _full_path_bytes(t, n, f_out) <= budget]
    if not fitting:
        return None
    tm = fitting[0]
    if b * _cdiv(n, tm) < 2:                 # keep both v7x TensorCores busy
        for t in fitting:
            if b * _cdiv(n, t) >= 2:
                tm = t
                break
    return tm


def _pick_ktiled(n, f_out, budget):
    tks = [t for t in (2048, 1024, 512, 256, 128) if t <= _round_up(n, 128)] or [128]
    tms = [t for t in (512, 256, 128, 64, 32, 16, 8) if t <= _round_up(n, 8)] or [8]
    for tk in tks:
        for tm in tms:
            need = 2 * tm * tk * 4 + 2 * tk * f_out * 2 + 2 * tm * f_out * 4 + (1 << 20)
            if need <= budget:
                return tm, tk
    return tms[-1], tks[-1]


# ------------------------------------------------------------------ wrapper --
@functools.partial(jax.jit, static_argnames=("force_ktiled",))
def graph_convolution(x, adj, weight, bias=None, *, force_ktiled=False):
    """GCN forward: adj @ (x @ weight) (+ bias).

    x: (B, N, F_in), adj: (B, N, N), weight: (F_in, F_out),
    bias: (1, 1, F_out) or None.  Returns (B, N, F_out) float32.
    """
    B, N, F_in = x.shape
    F_out = weight.shape[1]

    # ---- stage 1: support = x @ W, batch folded into rows, bf16 output -----
    R = B * N
    cap = _round_up(min(R, 512), 8)
    tr_cands = sorted({c for c in (512, 256, 128, 64, 32, 16, 8, cap) if c <= cap},
                      reverse=True)
    TR = next(
        (t for t in tr_cands
         if 2 * t * F_in * 4 + 2 * t * F_out * 2 + 2 * F_in * F_out * 4 + (1 << 20)
         <= _VMEM_BUDGET),
        tr_cands[-1],
    )

    support = pl.pallas_call(
        _support_kernel,
        out_shape=jax.ShapeDtypeStruct((R, F_out), jnp.bfloat16),
        grid_spec=pltpu.PrefetchScalarGridSpec(
            num_scalar_prefetch=0,
            grid=(_cdiv(R, TR),),
            in_specs=[
                pl.BlockSpec((TR, F_in), lambda r: (r, 0)),
                pl.BlockSpec((F_in, F_out), lambda r: (0, 0)),
            ],
            out_specs=pl.BlockSpec((TR, F_out), lambda r: (r, 0)),
        ),
        compiler_params=pltpu.CompilerParams(
            dimension_semantics=("parallel",),
            vmem_limit_bytes=_VMEM_LIMIT,
        ),
    )(x.reshape(R, F_in), weight)
    support = support.reshape(B, N, F_out)

    has_bias = bias is not None
    bias_2d = bias.reshape(1, F_out).astype(jnp.float32) if has_bias else None

    # ---- stage 2 fast path: full-N adj stripe x resident support slab ------
    tm_full = None if force_ktiled else _pick_tm_full(B, N, F_out, _VMEM_BUDGET)

    if tm_full is not None:
        TM = tm_full
        in_specs = [
            pl.BlockSpec((pl.Squeezed(), TM, N), lambda b, i: (b, i, 0)),
            pl.BlockSpec((pl.Squeezed(), N, F_out), lambda b, i: (b, 0, 0)),
        ]
        args = [adj, support]
        if has_bias:
            in_specs.append(pl.BlockSpec((1, F_out), lambda b, i: (0, 0)))
            args.append(bias_2d)

        return pl.pallas_call(
            functools.partial(_agg_full_kernel, has_bias=has_bias),
            out_shape=jax.ShapeDtypeStruct((B, N, F_out), jnp.float32),
            grid_spec=pltpu.PrefetchScalarGridSpec(
                num_scalar_prefetch=0,
                grid=(B, _cdiv(N, TM)),
                in_specs=in_specs,
                out_specs=pl.BlockSpec((pl.Squeezed(), TM, F_out),
                                       lambda b, i: (b, i, 0)),
            ),
            compiler_params=pltpu.CompilerParams(
                dimension_semantics=("parallel", "parallel"),
                vmem_limit_bytes=_VMEM_LIMIT,
            ),
        )(*args)

    # ---- stage 2 fallback: k-tiled adj, accumulate into resident o_ref -----
    TM, TK = _pick_ktiled(N, F_out, _VMEM_BUDGET)
    num_k = _cdiv(N, TK)
    sup_p = support
    if num_k * TK != N:
        # Support is tiny relative to adj; zero-pad its row dim so the (TK, F_out)
        # k-blocks stay in bounds (adj's ragged columns are masked in-kernel).
        sup_p = jnp.pad(support, ((0, 0), (0, num_k * TK - N), (0, 0)))
    mask_cols = (N % TK) != 0

    in_specs = [
        pl.BlockSpec((pl.Squeezed(), TM, TK), lambda b, i, k: (b, i, k)),
        pl.BlockSpec((pl.Squeezed(), TK, F_out), lambda b, i, k: (b, k, 0)),
    ]
    args = [adj, sup_p]
    if has_bias:
        in_specs.append(pl.BlockSpec((1, F_out), lambda b, i, k: (0, 0)))
        args.append(bias_2d)

    return pl.pallas_call(
        functools.partial(_agg_ktiled_kernel, has_bias=has_bias,
                          tk=TK, n_cols=N, mask_cols=mask_cols),
        out_shape=jax.ShapeDtypeStruct((B, N, F_out), jnp.float32),
        grid_spec=pltpu.PrefetchScalarGridSpec(
            num_scalar_prefetch=0,
            grid=(B, _cdiv(N, TM), num_k),
            in_specs=in_specs,
            out_specs=pl.BlockSpec((pl.Squeezed(), TM, F_out),
                                   lambda b, i, k: (b, i, 0)),
        ),
        compiler_params=pltpu.CompilerParams(
            dimension_semantics=("parallel", "parallel", "arbitrary"),
            vmem_limit_bytes=_VMEM_LIMIT,
        ),
    )(*args)


# ----------------------------------------------------------------- helpers --
def init_params(key, in_features, out_features, bias=False):
    """Deterministic re-implementation of GraphConvolution.reset_parameters."""
    stdv = 1.0 / math.sqrt(out_features)
    kw, kb = jax.random.split(key)
    weight = jax.random.uniform(kw, (in_features, out_features),
                                dtype=jnp.float32, minval=-stdv, maxval=stdv)
    b = None
    if bias:
        b = jax.random.uniform(kb, (1, 1, out_features),
                               dtype=jnp.float32, minval=-stdv, maxval=stdv)
    return weight, b


def _reference(x, adj, weight, bias):
    """Plain-JAX forward mirroring the kernel's bf16/f32 math."""
    sup = jnp.dot(x.astype(jnp.bfloat16), weight.astype(jnp.bfloat16),
                  preferred_element_type=jnp.float32).astype(jnp.bfloat16)
    out = jnp.einsum("bij,bjf->bif", adj.astype(jnp.bfloat16), sup,
                     preferred_element_type=jnp.float32)
    if bias is not None:
        out = out + bias
    return out


if __name__ == "__main__":
    key = jax.random.PRNGKey(0)
    k_x, k_adj, k_p, k_x2, k_adj2, k_p2 = jax.random.split(key, 6)

    # Case 1: module defaults (bias=False), small shapes.
    B, N, F_in, F_out = 2, 16, 32, 64
    x = jax.random.normal(k_x, (B, N, F_in), dtype=jnp.float32)
    adj_raw = jax.random.uniform(k_adj, (B, N, N), dtype=jnp.float32)
    adj = adj_raw / jnp.sum(adj_raw, axis=-1, keepdims=True)
    weight, bias = init_params(k_p, F_in, F_out, bias=False)

    out = graph_convolution(x, adj, weight, bias)
    jax.block_until_ready(out)
    ref = _reference(x, adj, weight, bias)
    assert out.shape == (B, N, F_out)
    assert jnp.allclose(out, ref, atol=2e-3, rtol=2e-3), \
        float(jnp.max(jnp.abs(out - ref)))

    # Case 2: bias=True, non-aligned N -> exercises ragged edge tiles (no padding).
    B2, N2, F_in2, F_out2 = 1, 300, 48, 96
    x2 = jax.random.normal(k_x2, (B2, N2, F_in2), dtype=jnp.float32)
    adj2_raw = jax.random.uniform(k_adj2, (B2, N2, N2), dtype=jnp.float32)
    adj2 = adj2_raw / jnp.sum(adj2_raw, axis=-1, keepdims=True)
    weight2, bias2 = init_params(k_p2, F_in2, F_out2, bias=True)

    out2 = graph_convolution(x2, adj2, weight2, bias2)
    jax.block_until_ready(out2)
    ref2 = _reference(x2, adj2, weight2, bias2)
    assert out2.shape == (B2, N2, F_out2)
    assert jnp.allclose(out2, ref2, atol=2e-3, rtol=2e-3), \
        float(jnp.max(jnp.abs(out2 - ref2)))

    # Case 3: same data, forced through the large-N k-tiled fallback path.
    out3 = graph_convolution(x2, adj2, weight2, bias2, force_ktiled=True)
    jax.block_until_ready(out3)
    assert out3.shape == (B2, N2, F_out2)
    assert jnp.allclose(out3, ref2, atol=2e-3, rtol=2e-3), \
        float(jnp.max(jnp.abs(out3 - ref2)))

    print("KERNEL_OK")
</pallas_src>

<mosaic_0001>
module attributes {stable_mosaic.version = 11 : i64} {
  func.func @_support_kernel(%arg0: i32, %arg1: memref<32x32xf32, #tpu.memory_space<vmem>>, %arg2: memref<32x64xf32, #tpu.memory_space<vmem>>, %arg3: memref<32x64xbf16, #tpu.memory_space<vmem>>) attributes {dimension_semantics = [#tpu.dimension_semantics<parallel>], iteration_bounds = array<i64: 1>, scalar_prefetch = 0 : i64, scratch_operands = 0 : i64, tpu.core_type = #tpu.core_type<tc>, window_params = [{transform_indices = @transform_0, window_bounds = array<i64: 32, 32>}, {pipeline_mode = #tpu.pipeline_mode<synchronous>, transform_indices = @transform_1, window_bounds = array<i64: 32, 64>}, {transform_indices = @transform_2, window_bounds = array<i64: 32, 64>}]} {
    %c0 = arith.constant 0 : index
    %c0_0 = arith.constant 0 : index
    %0 = vector.load %arg1[%c0, %c0_0] : memref<32x32xf32, #tpu.memory_space<vmem>>, vector<32x32xf32>
    %1 = arith.truncf %0 : vector<32x32xf32> to vector<32x32xbf16>
    %c0_1 = arith.constant 0 : index
    %c0_2 = arith.constant 0 : index
    %2 = vector.load %arg2[%c0_1, %c0_2] : memref<32x64xf32, #tpu.memory_space<vmem>>, vector<32x64xf32>
    %3 = arith.truncf %2 : vector<32x64xf32> to vector<32x64xbf16>
    %cst = arith.constant dense<0.000000e+00> : vector<32x64xf32>
    %4 = tpu.matmul %1, %3, %cst {dimension_numbers = #tpu.dot_dimension_numbers<[1], [0], [0], [1], [0, 0, 1, 1], [], []>} : vector<32x32xbf16>, vector<32x64xbf16>, vector<32x64xf32> -> vector<32x64xf32>
    %5 = arith.truncf %4 : vector<32x64xf32> to vector<32x64xbf16>
    %c0_3 = arith.constant 0 : index
    %c0_4 = arith.constant 0 : index
    %6 = vector.load %arg3[%c0_3, %c0_4] : memref<32x64xbf16, #tpu.memory_space<vmem>>, vector<32x64xbf16>
    tpu.vector_store %arg3[%c0_3, %c0_4], %5 {strides = array<i32>} : memref<32x64xbf16, #tpu.memory_space<vmem>>, vector<32x64xbf16>,
    return
  }
  func.func @transform_0(%arg0: i32) -> (i32, i32) {
    %c0_i32 = arith.constant 0 : i32
    %c0_i32_0 = arith.constant 0 : i32
    return %arg0, %c0_i32 : i32, i32
  }
  func.func @transform_1(%arg0: i32) -> (i32, i32) {
    %c0_i32 = arith.constant 0 : i32
    %c0_i32_0 = arith.constant 0 : i32
    %c0_i32_1 = arith.constant 0 : i32
    return %c0_i32, %c0_i32_0 : i32, i32
  }
  func.func @transform_2(%arg0: i32) -> (i32, i32) {
    %c0_i32 = arith.constant 0 : i32
    %c0_i32_0 = arith.constant 0 : i32
    return %arg0, %c0_i32 : i32, i32
  }
}

module attributes {stable_mosaic.version = 11 : i64} {
  func.func @_agg_full_kernel(%arg0: i32, %arg1: i32, %arg2: memref<1x16x16xf32, #tpu.memory_space<vmem>>, %arg3: memref<1x16x64xbf16, #tpu.memory_space<vmem>>, %arg4: memref<1x16x64xf32, #tpu.memory_space<vmem>>) attributes {dimension_semantics = [#tpu.dimension_semantics<parallel>, #tpu.dimension_semantics<parallel>], iteration_bounds = array<i64: 2, 1>, scalar_prefetch = 0 : i64, scratch_operands = 0 : i64, tpu.core_type = #tpu.core_type<tc>, window_params = [{transform_indices = @transform_0, window_bounds = array<i64: 1, 16, 16>}, {transform_indices = @transform_1, window_bounds = array<i64: 1, 16, 64>}, {transform_indices = @transform_2, window_bounds = array<i64: 1, 16, 64>}]} {
    %c0 = arith.constant 0 : index
    %c0_0 = arith.constant 0 : index
    %c0_1 = arith.constant 0 : index
    %0 = vector.load %arg2[%c0, %c0_0, %c0_1] : memref<1x16x16xf32, #tpu.memory_space<vmem>>, vector<1x16x16xf32>
    %1 = vector.shape_cast %0 : vector<1x16x16xf32> to vector<16x16xf32>
    %2 = arith.truncf %1 : vector<16x16xf32> to vector<16x16xbf16>
    %c0_2 = arith.constant 0 : index
    %c0_3 = arith.constant 0 : index
    %c0_4 = arith.constant 0 : index
    %3 = vector.load %arg3[%c0_2, %c0_3, %c0_4] : memref<1x16x64xbf16, #tpu.memory_space<vmem>>, vector<1x16x64xbf16>
    %4 = vector.shape_cast %3 : vector<1x16x64xbf16> to vector<16x64xbf16>
    %cst = arith.constant dense<0.000000e+00> : vector<16x64xf32>
    %5 = tpu.matmul %2, %4, %cst {dimension_numbers = #tpu.dot_dimension_numbers<[1], [0], [0], [1], [0, 0, 1, 1], [], []>} : vector<16x16xbf16>, vector<16x64xbf16>, vector<16x64xf32> -> vector<16x64xf32>
    %c0_5 = arith.constant 0 : index
    %c0_6 = arith.constant 0 : index
    %c0_7 = arith.constant 0 : index
    %6 = vector.load %arg4[%c0_5, %c0_6, %c0_7] : memref<1x16x64xf32, #tpu.memory_space<vmem>>, vector<1x16x64xf32>
    %7 = vector.shape_cast %6 : vector<1x16x64xf32> to vector<16x64xf32>
    %8 = vector.shape_cast %5 : vector<16x64xf32> to vector<1x16x64xf32>
    tpu.vector_store %arg4[%c0_5, %c0_6, %c0_7], %8 {strides = array<i32>} : memref<1x16x64xf32, #tpu.memory_space<vmem>>, vector<1x16x64xf32>,
    return
  }
  func.func @transform_0(%arg0: i32, %arg1: i32) -> (i32, i32, i32) {
    %c0_i32 = arith.constant 0 : i32
    %c0_i32_0 = arith.constant 0 : i32
    return %arg0, %arg1, %c0_i32 : i32, i32, i32
  }
  func.func @transform_1(%arg0: i32, %arg1: i32) -> (i32, i32, i32) {
    %c0_i32 = arith.constant 0 : i32
    %c0_i32_0 = arith.constant 0 : i32
    %c0_i32_1 = arith.constant 0 : i32
    return %arg0, %c0_i32, %c0_i32_0 : i32, i32, i32
  }
  func.func @transform_2(%arg0: i32, %arg1: i32) -> (i32, i32, i32) {
    %c0_i32 = arith.constant 0 : i32
    %c0_i32_0 = arith.constant 0 : i32
    return %arg0, %arg1, %c0_i32 : i32, i32, i32
  }
}

</mosaic_0001>

<bundles_post_ra>
// kernel: graph_convolution.3
= control target key start
LH: loop header
LB: loop body
LE: loop exit
PB: predicated region body
PF: predicated region fallthrough
CT: control target
= control target key end

     0   :  { %7 = vsyncpa [#allocation3], 0  ;;  %s666_s0 = inlined_call_operand.vmem [shape: f32[2,16,16], index: 0, kind: input, shape index: {}]   ;;  %s667_s1 = inlined_call_operand.vmem [shape: bf16[2,16,64], index: 1, kind: input, shape index: {}]   ;;  %s668_s2 = inlined_call_operand.hbm [shape: f32[2,16,64], index: 2, kind: output, shape index: {}]  }
   0x1   :  { %9 = vsyncpa [#allocation3 + $0x1], 0  ;;  %s548_s9 = smov 0   ;;  %s550_s10 = smov 0  }
   0x2   :  { %s552_s11 = smov 0   ;;  %s554_s12 = smov 0  }
   0x3   :  { %s556_s13 = smov 0   ;;  %s558_s14 = smov 0  }
   0x4 LB: > { %s360_s15 = sadd.s32 4294967295, %s526_s14   ;;  %s361_s16 = sadd.s32 4294967294, %s526_s14   ;;  %s526_s14 = sphi %s558_s14, %s15_s14   ;;  %s522_s13 = sphi %s556_s13, %s675_s13   ;;  %s518_s12 = sphi %s554_s12, %s674_s12   ;;  %s514_s11 = sphi %s552_s11, %s673_s11   ;;  %s510_s10 = sphi %s550_s10, %s672_s10   ;;  %s506_s9 = sphi %s548_s9, %s671_s9  }
   0x5   : > { %s27_s17 = sadd.s32 1, %s522_s13  ;;  %s90_s18 = sadd.s32 1, %s514_s11 }
   0x6   : > { %p29_p0 = scmp.ge.s32.totalorder %s27_s17, 2  ;;  %p100_p1 = scmp.ne.s32.totalorder %s514_s11, %s510_s10 }
   0x7   : > { %p101_p2 = scmp.eq.s32.totalorder %s360_s15, 1  ;;  %p106_p3 = scmp.ne.s32.totalorder %s510_s10, %s506_s9 }
   0x8   : > { %s677_s17 = smov (%p29_p0, %s27_s17), 0  ;;  %p107_p5 = scmp.eq.s32.totalorder %s361_s16, 1 }
   0x9   : > { %p588_p4 = por %p101_p2, %p100_p1  ;;  %s85_s20 = ssub.s32 %s522_s13, %s677_s17 }
   0xa   : > { %p364_p6 = scmp.ge.s32.totalorder %s526_s14, 1  ;;  %p88_p7 = scmp.eq.s32.totalorder %s85_s20, 0 }
   0xb   : > { %p595_p8 = por %p107_p5, %p106_p3  ;;  %p146_p9 = scmp.lt.s32.totalorder %s526_s14, 3 }
   0xc   : > { %s601_s22 = scalar_select %p88_p7, %s514_s11, %s90_s18  }
   0xd   : > { %p147_p10 = pnand %p364_p6, %p146_p9 }
   0xe   : > { %p178_p11 = scmp.lt.s32.totalorder (!%p147_p10), %s518_s12, 1  ;;  %v528_v0 = vmov (!%p147_p10), 0.0   ;;  %vm529_vm0 = vmmov (!%p147_p10), 0   ;;  %vm205_vm1 = vcmask (!%p147_p10), 130048   ;;  %s174_s4 = sand.u32 (!%p147_p10), 1, %s510_s10   ;;  %vm250_vm2 = vcmask (!%p147_p10), 523264  }
   0xf   : > { %150 = sbr.rel (%p147_p10) target bundleno = 259 (0x103), region = 28  ;;  %382 = vmatprep.subr.bf16.mxu0 (!%p147_p10), %v528_v0  ;;  %384 = vmatprep.mubr.msk.bf16.mxu0 (!%p147_p10), %vm529_vm0, %v528_v0  ;;  %s365_s5 = sshll.u32 (!%p147_p10), %s174_s4, 4 }
  0x10   : > { %s176_s6 = scalar_lea.vmem (!%p147_p10), [#allocation2], %s365_s5  ;;  %s379_s8 = sshll.u32 (!%p147_p10), %s518_s12, 8 }
  0x11   : > { %s269_s7 = sshll.u32 (!%p147_p10), %s176_s6, 4  ;;  %s618_s18 = scalar_lea.hbm (!%p147_p10), %s668_s2, %s379_s8  ;;  %s613_s7 = int_to_ptr.vmem [resolvable:$true] %s269_s7 }
  0x12   : > { %s620_s20 = scalar_lea.sflag (!%p147_p10), [#allocation3], %s174_s4 }
  0x16   : > { %s179_s23 = scalar_select %p178_p11, %s518_s12, 1 }
  0x17   : > { %s448_s12 = scalar_lea.vmem %s613_s7, 256 }
  0x18   : > { %s377_s24 = sshll.u32 %s179_s23, 4  ;;  %s378_s25 = sshll.u32 %s179_s23, 3 }
  0x19   : > { %s185_s28 = scalar_lea.vmem %s666_s0, %s377_s24  ;;  %s191_s3 = scalar_lea.vmem %s667_s1, %s378_s25 }
  0x1a   : > { %v447_v1 = vld [vmem:[%s191_s3] sm:$0xff]   ;;  %v195_v3 = vld [vmem:[%s185_s28 + $0x8] sm:$0xff]  ;;  %p449_p12 = scmp.ne.s32.totalorder %s613_s7, %s448_s12  ;;  %s530_s23 = smov [#allocation2]  }
  0x1b   : > { %v194_v2 = vld [vmem:[%s185_s28] sm:$0xff]  ;;  %383 = vmatpush3.bf16.msra.mxu0 %v447_v1  ;;  %s452_s24 = sshll.u32 %s530_s23, 4  ;;  %s453_s24 = int_to_ptr.vmem [resolvable:$false] %s452_s24 }
  0x1c   : > { %v196_v4 = vpack.c.bf16 %v195_v3, %v194_v2  ;;  %p450_p13 = pnand %p449_p12, %p588_p4  ;;  %s454_s25 = scalar_lea.vmem %s453_s24, 512 }
  0x1d   : > { %p455_p1 = scmp.lt.s32.totalorder %s613_s7, %s453_s24  ;;  %p456_p2 = scmp.lt.s32.totalorder %s454_s25, %s448_s12 }
  0x1e   : > { %385 = vmatmul.mubr.msk.bf16.vlgmr.msra.gmra.mrb[0].mxu0 %vm205_vm1, %v196_v4  ;;  %p451_p0 = pneg %p450_p13 }
  0x1f   : > { %p457_p3 = por %p456_p2, %p455_p1 }
  0x21   : > { %p458_p5 = pnand %p457_p3, %p451_p0 }
  0xf1   : > { %v243_v5 = vpop.f32.mrb[0].mxu0 }
  0xf2   : > { %251 = vst.msk [vmem:[%s176_s6] sm:$0xff] %vm250_vm2, %v243_v5  ;;  %v386_v6 = vpop.f32.mrb[1].mxu0 }
  0xf3   : > { %v246_v7 = vpop.f32.mrb[2].mxu0 }
  0xf4   : > { %252 = vst.msk [vmem:[%s176_s6 + $0x8] sm:$0xff] %vm250_vm2, %v246_v7  ;;  %v387_v8 = vpop.f32.mrb[3].mxu0 }
  0xf5   : > { %461 = shalt.err (!%p458_p5)
}
  0xf6   : > { %s462_s26 = scalar_lea.hbm %s618_s18, 256  ;;  %s466_s29 = scalar_lea.hbm %s668_s2, 512 }
  0xf7   : > { %p463_p6 = scmp.ne.s32.totalorder %s618_s18, %s462_s26  ;;  %p467_p10 = scmp.lt.u32.totalorder %s618_s18, %s668_s2 }
  0xf8   : > { %p468_p11 = scmp.lt.u32.totalorder %s466_s29, %s462_s26  ;;  %p470_p13 = scmp.lt.u32.totalorder %s462_s26, %s618_s18 }
  0xf9   : > { %p464_p7 = pnand %p463_p6, %p588_p4 }
  0xfa   : > { %p469_p12 = por %p468_p11, %p467_p10 }
  0xfb   : > { %p465_p9 = pneg %p464_p7 }
  0xfc   : > { %p471_p0 = por %p470_p13, %p469_p12 }
  0xfe   : > { %p472_p1 = pnand %p471_p0, %p465_p9 }
 0x100   : > { %475 = shalt.err (!%p472_p1)
}
 0x101   : > { %s531_s4 = smov 128   ;;  %s532_s5 = smov 8  }
 0x102   : > { %388 = dma.vmem_to_hbm [thread:$0]  (%p588_p4), %s613_s7, 256, %s618_s18, %s620_s20, %s531_s4, %s531_s4, %s532_s5  }
 0x103 PF: > { %p394_p2 = scmp.ge.s32.totalorder %s526_s14, 2  ;;  %s284_s6 = sand.u32 1, %s506_s9  }
 0x104   : > { %s285_s8 = scalar_lea.sflag [#allocation3], %s284_s6 }
 0x105   : > { %p391_p3 = pnand %p394_p2, %p595_p8 }
 0x107   : > { %501 = dma.done.wait (!%p391_p3), %s285_s8, 256  }
 0x108   : > { %503 = vsyncadd (!%p391_p3), %s285_s8, 4294967040  ;;  %s15_s14 = sadd.s32 1, %s526_s14   ;;  %s671_s9 = smov %s510_s10 }
 0x109   : > { %p12_p5 = scmp.ge.s32.totalorder %s15_s14, 4   ;;  %s672_s10 = smov %s514_s11 }
 0x10a   : > { %s673_s11 = smov %s601_s22  ;;  %s674_s12 = smov %s522_s13 }
 0x10b   : > { %s675_s13 = smov %s677_s17  ;;  %14 = sbr.rel (!%p12_p5) target bundleno = 4 (0x4), region = 66 }
 0x112   :  { %290 = vsyncpa [#allocation3], 1 }
 0x113   :  { %292 = vsyncpa [#allocation3 + $0x1], 1 }

// kernel: graph_convolution.2
= control target key start
LH: loop header
LB: loop body
LE: loop exit
PB: predicated region body
PF: predicated region fallthrough
CT: control target
= control target key end

     0   :  { %7 = vsyncpa [#allocation3], 0  ;;  %s264_s0 = inlined_call_operand.hbm [shape: f32[32,32], index: 0, kind: input, shape index: {}]   ;;  %s265_s1 = inlined_call_operand.hbm [shape: f32[32,64], index: 1, kind: input, shape index: {}]   ;;  %s266_s2 = inlined_call_operand.vmem [shape: bf16[32,64], index: 2, kind: output, shape index: {}]  }
   0x1   :  { %8 = vsyncpa [#allocation5], 0  ;;  %s209_s9 = smov [#allocation2]   ;;  %s161_s13 = scalar_lea.hbm %s264_s0, 512 }
   0x2   :  { %s14_s10 = sshll.u32 %s209_s9, 4  ;;  %p162_p0 = scmp.ne.s32.totalorder %s264_s0, %s161_s13  ;;  %s15_s10 = int_to_ptr.vmem [resolvable:$true] %s14_s10 }
   0x3   :  { %p165_p1 = scmp.lt.u32.totalorder %s161_s13, %s264_s0 }
   0x5   :  { %p167_p2 = pnand %p165_p1, %p162_p0 }
   0x7   :  { %170 = shalt.err (!%p167_p2)
}
   0x8   :  { %s171_s18 = scalar_lea.vmem %s15_s10, 512  ;;  %p176_p4 = scmp.lt.s32.totalorder %s15_s10, %s15_s10 }
   0x9   :  { %p172_p3 = scmp.ne.s32.totalorder %s15_s10, %s171_s18  ;;  %p177_p5 = scmp.lt.s32.totalorder %s171_s18, %s171_s18 }
   0xb   :  { %p178_p6 = por %p177_p5, %p176_p4 }
   0xd   :  { %p179_p7 = pnand %p178_p6, %p172_p3 }
   0xf   :  { %182 = shalt.err (!%p179_p7)
}
  0x10   :  { %s210_s19 = smov 128   ;;  %s211_s20 = smov 8  }
  0x11   :  { %20 = dma.hbm_to_vmem [thread:$0]  %s264_s0, 512, %s15_s10, [#allocation3], %s210_s19, %s210_s19, %s211_s20  }
  0x12   :  { %s212_s23 = smov [#allocation4]   ;;  %s183_s27 = scalar_lea.hbm %s265_s1, 512 }
  0x13   :  { %s26_s24 = sshll.u32 %s212_s23, 4  ;;  %p184_p8 = scmp.ne.s32.totalorder %s265_s1, %s183_s27  ;;  %s27_s24 = int_to_ptr.vmem [resolvable:$true] %s26_s24 }
  0x14   :  { %p187_p9 = scmp.lt.u32.totalorder %s183_s27, %s265_s1 }
  0x16   :  { %p189_p10 = pnand %p187_p9, %p184_p8 }
  0x18   :  { %192 = shalt.err (!%p189_p10)
}
  0x19   :  { %s193_s4 = scalar_lea.vmem %s27_s24, 512  ;;  %p198_p12 = scmp.lt.s32.totalorder %s27_s24, %s27_s24 }
  0x1a   :  { %p194_p11 = scmp.ne.s32.totalorder %s27_s24, %s193_s4  ;;  %p199_p13 = scmp.lt.s32.totalorder %s193_s4, %s193_s4 }
  0x1c   :  { %p200_p0 = por %p199_p13, %p198_p12 }
  0x1e   :  { %p201_p1 = pnand %p200_p0, %p194_p11 }
  0x20   :  { %204 = shalt.err (!%p201_p1)
}
  0x21   :  { %32 = dma.hbm_to_vmem [thread:$0]  %s265_s1, 512, %s27_s24, [#allocation5], %s210_s19, %s210_s19, %s211_s20  }
  0x22   :  { %205 = dma.done.wait [#allocation3], 512  }
  0x23   :  { %206 = vsyncadd [#allocation3], 4294966784 }
  0x24   :  { %207 = dma.done.wait [#allocation5], 512  }
  0x25   :  { %208 = vsyncadd [#allocation5], 4294966784  ;;  %v46_v0 = vld [vmem:[#allocation4] sm:$0xff]  ;;  %v47_v1 = vld [vmem:[#allocation4 + $0x8] sm:$0xff]  ;;  %vm52_vm0 = vcmask 261120   ;;  %vm124_vm1 = vcmask 519168  }
  0x26   :  { %v48_v2 = vld [vmem:[#allocation4 + $0x10] sm:$0xff]  ;;  %v50_v3 = vpack.c.bf16 %v47_v1, %v46_v0  ;;  %v49_v4 = vld [vmem:[#allocation4 + $0x18] sm:$0xff]  ;;  %v40_v5 = vld [vmem:[#allocation2] sm:$0xff] }
  0x27   :  { %v41_v6 = vld [vmem:[#allocation2 + $0x8] sm:$0xff]  ;;  %v51_v7 = vpack.c.bf16 %v49_v4, %v48_v2  ;;  %v42_v9 = vld [vmem:[#allocation2 + $0x10] sm:$0xff]  ;;  %v43_v10 = vld [vmem:[#allocation2 + $0x18] sm:$0xff] }
  0x28   :  { %v44_v8 = vpack.c.bf16 %v41_v6, %v40_v5  ;;  %149 = vmatprep.subr.bf16.mxu0 %v50_v3  ;;  %v45_v11 = vpack.c.bf16 %v43_v10, %v42_v9 }
  0x29   :  { %150 = vmatpush3.bf16.msra.mxu0 %v50_v3 }
  0x2a   :  { %153 = vmatprep.mubr.msk.bf16.mxu0 %vm52_vm0, %v44_v8  ;;  %151 = vmatprep.subr.bf16.mxu0 %v51_v7 }
  0x2d   :  { %152 = vmatpush3.bf16.msra.mxu0 %v51_v7 }
  0x30   :  { %154 = vmatmul.mubr.msk.bf16.vlgmr.msra.gmra.mrb[0].mxu0 %vm52_vm0, %v45_v11 }
 0x103   :  { %v155_v12 = vpop.f32.mrb[0].mxu0 }
 0x104   :  { %v143_v13 = vpack.c.bf16 %v155_v12, %v155_v12  ;;  %v93_v14 = vpop.f32.mrb[1].mxu0 }
 0x105   :  { %v141_v15 = vpack.c.bf16 %v93_v14, %v93_v14  ;;  %v156_v16 = vpop.f32.mrb[2].mxu0 }
 0x106   :  { %127 = vst.msk [vmem:[%s266_s2 + $0x8] sm:$0xf] %vm124_vm1, %v143_v13  ;;  %v144_v17 = vpack.c.bf16 %v156_v16, %v156_v16  ;;  %v96_v18 = vpop.f32.mrb[3].mxu0 }
 0x107   :  { %125 = vst.msk [vmem:[%s266_s2] sm:$0xf] %vm124_vm1, %v141_v15  ;;  %v142_v19 = vpack.c.bf16 %v96_v18, %v96_v18 }
 0x108   :  { %128 = vst.msk [vmem:[%s266_s2 + $0xc] sm:$0xf] %vm124_vm1, %v144_v17 }
 0x109   :  { %126 = vst.msk [vmem:[%s266_s2 + $0x4] sm:$0xf] %vm124_vm1, %v142_v19 }
 0x10a   :  { %133 = vsyncpa [#allocation3], 1 }
 0x10b   :  { %134 = vsyncpa [#allocation5], 1 }

</bundles_post_ra>
